<compile_context>
chip_gen: v7x
topology: tpu7x:2x2x1
jax: 0.10.0
libtpu: 0.0.40
codegen_flags: <defaults>
</compile_context>

<pallas_src>
import functools

import jax
import jax.numpy as jnp
from jax import lax
from jax.experimental import pallas as pl
from jax.experimental.pallas import tpu as pltpu


# ----------------------------------------------------------------------------
# Tile / VMEM sizing helpers
# ----------------------------------------------------------------------------
_CHUNK_MAX = 256   # max in-kernel row chunk for the f32 compute
_TILE_CAP = 1024   # rows; >=512 already saturates HBM BW on all generations


def _sublane_multiple(dtype):
    # 32-bit: 8 rows/vreg, 16-bit: 16, 8-bit: 32 (sub-32-bit packs along sublanes).
    return {4: 8, 2: 16, 1: 32}.get(jnp.dtype(dtype).itemsize, 8)


def _vmem_capacity_bytes():
    try:
        return int(pltpu.get_tpu_info().vmem_capacity_bytes)
    except Exception:
        return 64 << 20  # conservative: v7x per-TensorCore VMEM


def _pick_chunk(d, sub):
    """Row chunk for the in-kernel f32 compute: bound ~3 f32 temp copies to ~2 MiB."""
    c = max(sub, (2 << 20) // (3 * d * 4))
    p = sub
    while p * 2 <= min(c, _CHUNK_MAX):
        p *= 2
    return p


def _pick_tile_m(n_rows, d, dtype):
    """VMEM-aware (tile_m, chunk). tile_m is a sublane multiple (or the full row
    extent for tiny inputs) and, when larger than `chunk`, a multiple of it."""
    sub = _sublane_multiple(dtype)
    chunk = _pick_chunk(d, sub)
    itemsize = jnp.dtype(dtype).itemsize

    # Live HBM<->VMEM blocks: 2x double-buffered input + 2x double-buffered output.
    # Use ~1/4 of physical VMEM for them (16 MiB on v7x, 32 MiB on v5e/v6e).
    block_budget = _vmem_capacity_bytes() // 4
    cap = max(sub, (block_budget // (4 * d * itemsize)) // sub * sub)
    cap = min(cap, _TILE_CAP)

    if n_rows <= min(chunk, cap):
        # Single full-extent block (full array dim: no sublane-multiple requirement).
        return n_rows, n_rows

    # Target >=8 grid steps (even; >=4 per TensorCore on v7x) for DMA/compute overlap.
    want = min(cap, pl.cdiv(n_rows, 8))
    if want > chunk:
        tile = (want // chunk) * chunk
    else:
        tile = max(sub, (want // sub) * sub)
    return tile, min(chunk, tile)


def _vmem_limit_bytes(tile_m, chunk, d, io_itemsize, param_itemsize):
    blocks = 4 * tile_m * d * io_itemsize      # 2 in + 2 out double-buffers
    temps = 3 * chunk * d * 4                  # f32 temporaries inside the kernel
    params = 2 * 2 * d * param_itemsize        # gamma/beta (double-buffered)
    need = blocks + temps + params + (4 << 20)  # headroom
    phys = _vmem_capacity_bytes()
    return int(min(max(need, 32 << 20), phys - (8 << 20)))


# ----------------------------------------------------------------------------
# Pallas kernel: LayerNorm over the last dim of a (tile_m, d) row tile.
# ----------------------------------------------------------------------------
def _layernorm_kernel(x_ref, g_ref, b_ref, out_ref, *, eps, chunk):
    g = g_ref[...].astype(jnp.float32)
    b = b_ref[...].astype(jnp.float32)

    def normalize(x):  # x: (rows, d) f32
        mean = jnp.mean(x, axis=-1, keepdims=True)
        c = x - mean
        var = jnp.mean(c * c, axis=-1, keepdims=True)
        inv = lax.rsqrt(var + eps)  # EUP rsqrt, f32
        return c * inv * g + b

    rows = x_ref.shape[0]
    n_chunks = rows // chunk
    if n_chunks <= 1:
        out_ref[...] = normalize(x_ref[...].astype(jnp.float32)).astype(out_ref.dtype)
    else:
        # Chunk the compute so the f32 temporaries stay within vregs / small
        # scratch even when the DMA tile is large (matters for bf16 inputs).
        def body(i, carry):
            r0 = pl.multiple_of(i * chunk, chunk)
            x = x_ref[pl.ds(r0, chunk), :].astype(jnp.float32)
            out_ref[pl.ds(r0, chunk), :] = normalize(x).astype(out_ref.dtype)
            return carry

        lax.fori_loop(0, n_chunks, body, 0, unroll=(n_chunks <= 8))


def _layer_norm_xla(x, gamma, beta, eps):
    x32 = x.astype(jnp.float32)
    mean = jnp.mean(x32, axis=-1, keepdims=True)
    var = jnp.mean((x32 - mean) ** 2, axis=-1, keepdims=True)
    y = (x32 - mean) * lax.rsqrt(var + eps) * gamma.astype(jnp.float32) + beta.astype(jnp.float32)
    return y.astype(x.dtype)


def layer_norm_pallas(x, gamma, beta, *, eps=1e-5):
    """LayerNorm over the last axis, any number of leading dims."""
    orig_shape = x.shape
    d = orig_shape[-1]

    if d < 128:
        # Lane-dense guard: with d < 128 every store is a masked vst at <=50%
        # lane utilization and launch overhead dominates — let XLA fuse it.
        # TODO(synk): repack 128//d rows per lane group to keep a lane-dense
        # Pallas path for tiny feature dims.
        return _layer_norm_xla(x, gamma, beta, eps)

    x2 = x.reshape(-1, d)
    n = x2.shape[0]
    tile_m, chunk = _pick_tile_m(n, d, x2.dtype)
    # No padding: last block may be partial; its out-of-bounds output rows are
    # dropped and LN never reduces across rows, so garbage rows are harmless.
    grid = (pl.cdiv(n, tile_m),)

    g2 = gamma.reshape(1, d)
    b2 = beta.reshape(1, d)

    io_bytes = jnp.dtype(x.dtype).itemsize
    param_bytes = jnp.dtype(gamma.dtype).itemsize

    kernel = functools.partial(_layernorm_kernel, eps=eps, chunk=chunk)

    out = pl.pallas_call(
        kernel,
        out_shape=jax.ShapeDtypeStruct((n, d), x.dtype),
        grid_spec=pltpu.PrefetchScalarGridSpec(
            num_scalar_prefetch=0,
            grid=grid,
            in_specs=[
                pl.BlockSpec((tile_m, d), lambda i: (i, 0)),  # streaming x rows
                pl.BlockSpec((1, d), lambda i: (0, 0)),       # resident gamma
                pl.BlockSpec((1, d), lambda i: (0, 0)),       # resident beta
            ],
            out_specs=pl.BlockSpec((tile_m, d), lambda i: (i, 0)),
        ),
        compiler_params=pltpu.CompilerParams(
            dimension_semantics=("parallel",),
            vmem_limit_bytes=_vmem_limit_bytes(tile_m, chunk, d, io_bytes, param_bytes),
        ),
        cost_estimate=pl.CostEstimate(
            flops=7 * n * d,
            transcendentals=n,
            bytes_accessed=2 * n * d * io_bytes + 2 * d * param_bytes,
        ),
    )(x2, g2, b2)

    return out.reshape(orig_shape)


# ----------------------------------------------------------------------------
# PreNorm.forward
# ----------------------------------------------------------------------------
def prenorm_forward(x, fn, norm_params, *, context=None,
                    norm_context_params=None, **kwargs):
    """x = LayerNorm(x); optionally context = LayerNorm(context); return fn(x, **kwargs)."""
    x_n = layer_norm_pallas(x, norm_params["gamma"], norm_params["beta"])
    if norm_context_params is not None:
        assert context is not None, "context required when norm_context exists"
        ctx_n = layer_norm_pallas(
            context, norm_context_params["gamma"], norm_context_params["beta"])
        kwargs = dict(kwargs, context=ctx_n)
    elif context is not None:
        kwargs = dict(kwargs, context=context)
    # TODO(synk): self.fn is an arbitrary wrapped nn.Module; applied here as a
    # plain JAX callable. When fn is a known matmul/attention kernel, the LN
    # should be fused as a prologue into fn's kernel to avoid the HBM
    # write-then-reread of the normalized activations.
    return fn(x_n, **kwargs)


# Pure-JAX reference LayerNorm for sanity checking.
def layer_norm_ref(x, gamma, beta, eps=1e-5):
    mean = jnp.mean(x, axis=-1, keepdims=True)
    var = jnp.mean((x - mean) ** 2, axis=-1, keepdims=True)
    return (x - mean) / jnp.sqrt(var + eps) * gamma + beta


if __name__ == "__main__":
    # Small shapes: batch=2, seq=8, dim=128; context seq=8, context_dim=256.
    B, S, DIM = 2, 8, 128
    S_CTX, CTX_DIM = 8, 256
    D_OUT = 16

    key = jax.random.PRNGKey(0)
    kx, kc, kg1, kb1, kg2, kb2, kw1, kw2, kbig, ksm = jax.random.split(key, 10)

    x = jax.random.normal(kx, (B, S, DIM), jnp.float32)
    context = jax.random.normal(kc, (B, S_CTX, CTX_DIM), jnp.float32)

    norm_params = {
        "gamma": 1.0 + 0.1 * jax.random.normal(kg1, (DIM,), jnp.float32),
        "beta": 0.1 * jax.random.normal(kb1, (DIM,), jnp.float32),
    }
    norm_context_params = {
        "gamma": 1.0 + 0.1 * jax.random.normal(kg2, (CTX_DIM,), jnp.float32),
        "beta": 0.1 * jax.random.normal(kb2, (CTX_DIM,), jnp.float32),
    }

    # Stand-in for the wrapped module `fn`: consumes normed x and normed context.
    w_x = 0.1 * jax.random.normal(kw1, (DIM, D_OUT), jnp.float32)
    w_c = 0.1 * jax.random.normal(kw2, (CTX_DIM, D_OUT), jnp.float32)

    def fn(x_normed, context):
        return x_normed @ w_x + jnp.mean(context, axis=1, keepdims=True) @ w_c

    fwd = jax.jit(lambda xx, cc: prenorm_forward(
        xx, fn, norm_params, context=cc, norm_context_params=norm_context_params))

    out = jax.block_until_ready(fwd(x, context))
    ref = fn(
        layer_norm_ref(x, norm_params["gamma"], norm_params["beta"]),
        context=layer_norm_ref(context, norm_context_params["gamma"],
                               norm_context_params["beta"]),
    )
    assert out.shape == (B, S, D_OUT)
    assert jnp.allclose(out, ref, atol=1e-4, rtol=1e-4)

    # Exercise the multi-step grid + partial (unpadded) last block path.
    x_big = jax.random.normal(kbig, (3, 200, DIM), jnp.float32)  # 600 rows, 9 steps
    ln_big = jax.block_until_ready(
        jax.jit(lambda a: layer_norm_pallas(a, norm_params["gamma"],
                                            norm_params["beta"]))(x_big))
    assert jnp.allclose(
        ln_big, layer_norm_ref(x_big, norm_params["gamma"], norm_params["beta"]),
        atol=1e-4, rtol=1e-4)

    # Exercise the d < 128 (lane-sparse) XLA-fallback path.
    x_small = jax.random.normal(ksm, (2, 8, 32), jnp.float32)
    g_small = jnp.ones((32,), jnp.float32)
    b_small = jnp.zeros((32,), jnp.float32)
    ln_small = jax.block_until_ready(layer_norm_pallas(x_small, g_small, b_small))
    assert jnp.allclose(ln_small, layer_norm_ref(x_small, g_small, b_small),
                        atol=1e-4, rtol=1e-4)

    print("KERNEL_OK")
</pallas_src>

<mosaic_0001>
module attributes {stable_mosaic.version = 11 : i64} {
  func.func @_layernorm_kernel(%arg0: i32, %arg1: memref<16x128xf32, #tpu.memory_space<vmem>>, %arg2: memref<1x128xf32, #tpu.memory_space<vmem>>, %arg3: memref<1x128xf32, #tpu.memory_space<vmem>>, %arg4: memref<16x128xf32, #tpu.memory_space<vmem>>) attributes {dimension_semantics = [#tpu.dimension_semantics<parallel>], iteration_bounds = array<i64: 1>, scalar_prefetch = 0 : i64, scratch_operands = 0 : i64, tpu.core_type = #tpu.core_type<tc>, window_params = [{transform_indices = @transform_0, window_bounds = array<i64: 16, 128>}, {pipeline_mode = #tpu.pipeline_mode<synchronous>, transform_indices = @transform_1, window_bounds = array<i64: 1, 128>}, {pipeline_mode = #tpu.pipeline_mode<synchronous>, transform_indices = @transform_2, window_bounds = array<i64: 1, 128>}, {transform_indices = @transform_3, window_bounds = array<i64: 16, 128>}]} {
    %c0 = arith.constant 0 : index
    %c0_0 = arith.constant 0 : index
    %0 = vector.load %arg2[%c0, %c0_0] : memref<1x128xf32, #tpu.memory_space<vmem>>, vector<1x128xf32>
    %c0_1 = arith.constant 0 : index
    %c0_2 = arith.constant 0 : index
    %1 = vector.load %arg3[%c0_1, %c0_2] : memref<1x128xf32, #tpu.memory_space<vmem>>, vector<1x128xf32>
    %c0_3 = arith.constant 0 : index
    %c0_4 = arith.constant 0 : index
    %2 = vector.load %arg1[%c0_3, %c0_4] : memref<16x128xf32, #tpu.memory_space<vmem>>, vector<16x128xf32>
    %cst = arith.constant dense<0.000000e+00> : vector<16xf32>
    %3 = vector.multi_reduction <add>, %2, %cst [1] : vector<16x128xf32> to vector<16xf32>
    %4 = vector.shape_cast %3 : vector<16xf32> to vector<16x1xf32>
    %cst_5 = arith.constant 1.280000e+02 : f32
    %5 = vector.broadcast %cst_5 : f32 to vector<16x1xf32>
    %6 = arith.divf %4, %5 : vector<16x1xf32>
    %7 = vector.broadcast %6 : vector<16x1xf32> to vector<16x128xf32>
    %8 = arith.subf %2, %7 : vector<16x128xf32>
    %9 = arith.mulf %8, %8 : vector<16x128xf32>
    %cst_6 = arith.constant dense<0.000000e+00> : vector<16xf32>
    %10 = vector.multi_reduction <add>, %9, %cst_6 [1] : vector<16x128xf32> to vector<16xf32>
    %11 = vector.shape_cast %10 : vector<16xf32> to vector<16x1xf32>
    %cst_7 = arith.constant 1.280000e+02 : f32
    %12 = vector.broadcast %cst_7 : f32 to vector<16x1xf32>
    %13 = arith.divf %11, %12 : vector<16x1xf32>
    %cst_8 = arith.constant 9.99999974E-6 : f32
    %14 = vector.broadcast %cst_8 : f32 to vector<16x1xf32>
    %15 = arith.addf %13, %14 : vector<16x1xf32>
    %16 = math.rsqrt %15 : vector<16x1xf32>
    %17 = vector.broadcast %16 : vector<16x1xf32> to vector<16x128xf32>
    %18 = arith.mulf %8, %17 : vector<16x128xf32>
    %19 = vector.broadcast %0 : vector<1x128xf32> to vector<16x128xf32>
    %20 = arith.mulf %18, %19 : vector<16x128xf32>
    %21 = vector.broadcast %1 : vector<1x128xf32> to vector<16x128xf32>
    %22 = arith.addf %20, %21 : vector<16x128xf32>
    %c0_9 = arith.constant 0 : index
    %c0_10 = arith.constant 0 : index
    %23 = vector.load %arg4[%c0_9, %c0_10] : memref<16x128xf32, #tpu.memory_space<vmem>>, vector<16x128xf32>
    tpu.vector_store %arg4[%c0_9, %c0_10], %22 {strides = array<i32>} : memref<16x128xf32, #tpu.memory_space<vmem>>, vector<16x128xf32>,
    return
  }
  func.func @transform_0(%arg0: i32) -> (i32, i32) {
    %c0_i32 = arith.constant 0 : i32
    %c0_i32_0 = arith.constant 0 : i32
    return %arg0, %c0_i32 : i32, i32
  }
  func.func @transform_1(%arg0: i32) -> (i32, i32) {
    %c0_i32 = arith.constant 0 : i32
    %c0_i32_0 = arith.constant 0 : i32
    %c0_i32_1 = arith.constant 0 : i32
    return %c0_i32, %c0_i32_0 : i32, i32
  }
  func.func @transform_2(%arg0: i32) -> (i32, i32) {
    %c0_i32 = arith.constant 0 : i32
    %c0_i32_0 = arith.constant 0 : i32
    %c0_i32_1 = arith.constant 0 : i32
    return %c0_i32, %c0_i32_0 : i32, i32
  }
  func.func @transform_3(%arg0: i32) -> (i32, i32) {
    %c0_i32 = arith.constant 0 : i32
    %c0_i32_0 = arith.constant 0 : i32
    return %arg0, %c0_i32 : i32, i32
  }
}

module attributes {stable_mosaic.version = 11 : i64} {
  func.func @_layernorm_kernel(%arg0: i32, %arg1: memref<16x256xf32, #tpu.memory_space<vmem>>, %arg2: memref<1x256xf32, #tpu.memory_space<vmem>>, %arg3: memref<1x256xf32, #tpu.memory_space<vmem>>, %arg4: memref<16x256xf32, #tpu.memory_space<vmem>>) attributes {dimension_semantics = [#tpu.dimension_semantics<parallel>], iteration_bounds = array<i64: 1>, scalar_prefetch = 0 : i64, scratch_operands = 0 : i64, tpu.core_type = #tpu.core_type<tc>, window_params = [{transform_indices = @transform_0, window_bounds = array<i64: 16, 256>}, {pipeline_mode = #tpu.pipeline_mode<synchronous>, transform_indices = @transform_1, window_bounds = array<i64: 1, 256>}, {pipeline_mode = #tpu.pipeline_mode<synchronous>, transform_indices = @transform_2, window_bounds = array<i64: 1, 256>}, {transform_indices = @transform_3, window_bounds = array<i64: 16, 256>}]} {
    %c0 = arith.constant 0 : index
    %c0_0 = arith.constant 0 : index
    %0 = vector.load %arg2[%c0, %c0_0] : memref<1x256xf32, #tpu.memory_space<vmem>>, vector<1x256xf32>
    %c0_1 = arith.constant 0 : index
    %c0_2 = arith.constant 0 : index
    %1 = vector.load %arg3[%c0_1, %c0_2] : memref<1x256xf32, #tpu.memory_space<vmem>>, vector<1x256xf32>
    %c0_3 = arith.constant 0 : index
    %c0_4 = arith.constant 0 : index
    %2 = vector.load %arg1[%c0_3, %c0_4] : memref<16x256xf32, #tpu.memory_space<vmem>>, vector<16x256xf32>
    %cst = arith.constant dense<0.000000e+00> : vector<16xf32>
    %3 = vector.multi_reduction <add>, %2, %cst [1] : vector<16x256xf32> to vector<16xf32>
    %4 = vector.shape_cast %3 : vector<16xf32> to vector<16x1xf32>
    %cst_5 = arith.constant 2.560000e+02 : f32
    %5 = vector.broadcast %cst_5 : f32 to vector<16x1xf32>
    %6 = arith.divf %4, %5 : vector<16x1xf32>
    %7 = vector.broadcast %6 : vector<16x1xf32> to vector<16x256xf32>
    %8 = arith.subf %2, %7 : vector<16x256xf32>
    %9 = arith.mulf %8, %8 : vector<16x256xf32>
    %cst_6 = arith.constant dense<0.000000e+00> : vector<16xf32>
    %10 = vector.multi_reduction <add>, %9, %cst_6 [1] : vector<16x256xf32> to vector<16xf32>
    %11 = vector.shape_cast %10 : vector<16xf32> to vector<16x1xf32>
    %cst_7 = arith.constant 2.560000e+02 : f32
    %12 = vector.broadcast %cst_7 : f32 to vector<16x1xf32>
    %13 = arith.divf %11, %12 : vector<16x1xf32>
    %cst_8 = arith.constant 9.99999974E-6 : f32
    %14 = vector.broadcast %cst_8 : f32 to vector<16x1xf32>
    %15 = arith.addf %13, %14 : vector<16x1xf32>
    %16 = math.rsqrt %15 : vector<16x1xf32>
    %17 = vector.broadcast %16 : vector<16x1xf32> to vector<16x256xf32>
    %18 = arith.mulf %8, %17 : vector<16x256xf32>
    %19 = vector.broadcast %0 : vector<1x256xf32> to vector<16x256xf32>
    %20 = arith.mulf %18, %19 : vector<16x256xf32>
    %21 = vector.broadcast %1 : vector<1x256xf32> to vector<16x256xf32>
    %22 = arith.addf %20, %21 : vector<16x256xf32>
    %c0_9 = arith.constant 0 : index
    %c0_10 = arith.constant 0 : index
    %23 = vector.load %arg4[%c0_9, %c0_10] : memref<16x256xf32, #tpu.memory_space<vmem>>, vector<16x256xf32>
    tpu.vector_store %arg4[%c0_9, %c0_10], %22 {strides = array<i32>} : memref<16x256xf32, #tpu.memory_space<vmem>>, vector<16x256xf32>,
    return
  }
  func.func @transform_0(%arg0: i32) -> (i32, i32) {
    %c0_i32 = arith.constant 0 : i32
    %c0_i32_0 = arith.constant 0 : i32
    return %arg0, %c0_i32 : i32, i32
  }
  func.func @transform_1(%arg0: i32) -> (i32, i32) {
    %c0_i32 = arith.constant 0 : i32
    %c0_i32_0 = arith.constant 0 : i32
    %c0_i32_1 = arith.constant 0 : i32
    return %c0_i32, %c0_i32_0 : i32, i32
  }
  func.func @transform_2(%arg0: i32) -> (i32, i32) {
    %c0_i32 = arith.constant 0 : i32
    %c0_i32_0 = arith.constant 0 : i32
    %c0_i32_1 = arith.constant 0 : i32
    return %c0_i32, %c0_i32_0 : i32, i32
  }
  func.func @transform_3(%arg0: i32) -> (i32, i32) {
    %c0_i32 = arith.constant 0 : i32
    %c0_i32_0 = arith.constant 0 : i32
    return %arg0, %c0_i32 : i32, i32
  }
}

</mosaic_0001>

<bundles_post_ra>
// kernel: _lambda_.2
= control target key start
LH: loop header
LB: loop body
LE: loop exit
PB: predicated region body
PF: predicated region fallthrough
CT: control target
= control target key end

     0   :  { %s107_s0 = inlined_call_operand.vmem [shape: f32[16,128], index: 0, kind: input, shape index: {}]   ;;  %s108_s1 = inlined_call_operand.vmem [shape: f32[1,128], index: 1, kind: input, shape index: {}]   ;;  %s109_s2 = inlined_call_operand.vmem [shape: f32[1,128], index: 2, kind: input, shape index: {}]   ;;  %s110_s3 = inlined_call_operand.vmem [shape: f32[16,128], index: 3, kind: output, shape index: {}]  }
   0x1   :  { %v16_v0 = vld [vmem:[%s107_s0] sm:$0xff]  ;;  %v17_v1 = vld [vmem:[%s107_s0 + $0x8] sm:$0xff] }
   0x2   :  { %18 = vadd.xlane.f32.xlu0 %v16_v0  ;;  %v63_v17 = vld [vmem:[%s108_s1] ss:$0 sm:$0xff] }
   0x3   :  { %v64_v19 = vld [vmem:[%s109_s2] ss:$0 sm:$0xff] }
   0x6   :  { %20 = vadd.xlane.f32.xlu0 %v17_v1 }
  0x8f   :  { %v19_v2 = vpop.xlane.xlu0 %18 }
  0x90   :  { %v23_v3 = vmul.f32 0.0078125, %v19_v2 }
  0x92   :  { %v25_v4 = vsub.f32 %v16_v0, %v23_v3 }
  0x93   :  { %v21_v5 = vpop.xlane.xlu0 %20 }
  0x94   :  { %v24_v6 = vmul.f32 0.0078125, %v21_v5  ;;  %v27_v7 = vmul.f32 %v25_v4, %v25_v4 }
  0x96   :  { %v26_v8 = vsub.f32 %v17_v1, %v24_v6  ;;  %29 = vadd.xlane.f32.xlu1 %v27_v7 }
  0x98   :  { %v28_v9 = vmul.f32 %v26_v8, %v26_v8 }
  0x9a   :  { %31 = vadd.xlane.f32.xlu1 %v28_v9 }
 0x123   :  { %v30_v10 = vpop.xlane.xlu1 %29 }
 0x124   :  { %v33_v11 = vmul.f32 0.0078125, %v30_v10 }
 0x126   :  { %v35_v12 = vadd.f32 1e-05, %v33_v11 }
 0x127   :  { %v32_v13 = vpop.xlane.xlu1 %31 }
 0x128   :  { %65 = vrsqrt.f32 %v35_v12  ;;  %v34_v14 = vmul.f32 0.0078125, %v32_v13 }
 0x12a   :  { %v36_v15 = vadd.f32 1e-05, %v34_v14 }
 0x12c   :  { %67 = vrsqrt.f32 %v36_v15 }
 0x132   :  { %v66_v16 = vpop.eup %65 }
 0x133   :  { %v39_v18 = vmul.f32 %v66_v16, %v25_v4 }
 0x135   :  { %v47_v20 = vmul.f32 %v63_v17, %v39_v18 }
 0x136   :  { %v68_v21 = vpop.eup %67 }
 0x137   :  { %v55_v22 = vadd.f32 %v64_v19, %v47_v20  ;;  %v40_v23 = vmul.f32 %v68_v21, %v26_v8 }
 0x139   :  { %57 = vst [vmem:[%s110_s3] sm:$0xff] %v55_v22  ;;  %v48_v24 = vmul.f32 %v63_v17, %v40_v23 }
 0x13b   :  { %v56_v25 = vadd.f32 %v64_v19, %v48_v24 }
 0x13d   :  { %58 = vst [vmem:[%s110_s3 + $0x8] sm:$0xff] %v56_v25 }

// kernel: _lambda_.3
= control target key start
LH: loop header
LB: loop body
LE: loop exit
PB: predicated region body
PF: predicated region fallthrough
CT: control target
= control target key end

     0   :  { %8 = vsyncpa [#allocation3], 0  ;;  %s137_s12 = smov [#allocation2]   ;;  %s190_s0 = inlined_call_operand.hbm [shape: f32[16,256], index: 0, kind: input, shape index: {}]   ;;  %s191_s1 = inlined_call_operand.vmem [shape: f32[1,256], index: 1, kind: input, shape index: {}]   ;;  %s192_s2 = inlined_call_operand.vmem [shape: f32[1,256], index: 2, kind: input, shape index: {}]   ;;  %s193_s3 = inlined_call_operand.vmem [shape: f32[16,256], index: 3, kind: output, shape index: {}]  }
   0x1   :  { %s14_s13 = sshll.u32 %s137_s12, 4  ;;  %s113_s16 = scalar_lea.hbm %s190_s0, 512  ;;  %s15_s13 = int_to_ptr.vmem [resolvable:$true] %s14_s13 }
   0x2   :  { %p114_p0 = scmp.ne.s32.totalorder %s190_s0, %s113_s16  ;;  %p117_p1 = scmp.lt.u32.totalorder %s113_s16, %s190_s0 }
   0x4   :  { %p119_p2 = pnand %p117_p1, %p114_p0 }
   0x6   :  { %122 = shalt.err (!%p119_p2)
}
   0x7   :  { %s123_s21 = scalar_lea.vmem %s15_s13, 512  ;;  %p128_p4 = scmp.lt.s32.totalorder %s15_s13, %s15_s13 }
   0x8   :  { %p124_p3 = scmp.ne.s32.totalorder %s15_s13, %s123_s21  ;;  %p129_p5 = scmp.lt.s32.totalorder %s123_s21, %s123_s21 }
   0xa   :  { %p130_p6 = por %p129_p5, %p128_p4 }
   0xc   :  { %p131_p7 = pnand %p130_p6, %p124_p3 }
   0xe   :  { %134 = shalt.err (!%p131_p7)
}
   0xf   :  { %s138_s22 = smov 256   ;;  %s139_s23 = smov 16  }
  0x10   :  { %20 = dma.hbm_to_vmem [thread:$0]  %s190_s0, 512, %s15_s13, [#allocation3], %s138_s22, %s138_s22, %s139_s23  }
  0x11   :  { %135 = dma.done.wait [#allocation3], 512  }
  0x12   :  { %136 = vsyncadd [#allocation3], 4294966784  ;;  %v30_v0 = vld [vmem:[#allocation2] sm:$0xff]  ;;  %v31_v1 = vld [vmem:[#allocation2 + $0x8] sm:$0xff]  ;;  %v68_v22 = vlaneseq }
  0x13   :  { %v32_v2 = vld [vmem:[#allocation2 + $0x10] sm:$0xff]  ;;  %v34_v3 = vadd.f32 %v31_v1, %v30_v0  ;;  %v33_v4 = vld [vmem:[#allocation2 + $0x18] sm:$0xff]  ;;  %v28_v30 = vld [vmem:[%s191_s1] sm:$0x3] }
  0x14   :  { %v37_v5 = vadd.f32 %v33_v4, %v32_v2  ;;  %v69_v26 = vshrl.u32 %v68_v22, 7  ;;  %v29_v31 = vld [vmem:[%s192_s2] sm:$0x3] }
  0x15   :  { %35 = vadd.xlane.f32.xlu0 %v34_v3 }
  0x16   :  { %v70_v28 = vsub.s32 0, %v69_v26  ;;  %v74_v29 = vsub.s32 1, %v69_v26 }
  0x18   :  { %v71_v32 = vrot.slane %v28_v30, %v70_v28  ;;  %v75_v33 = vrot.slane %v28_v30, %v74_v29  ;;  %v86_v37 = vrot.slane %v29_v31, %v70_v28  ;;  %v90_v38 = vrot.slane %v29_v31, %v74_v29 }
  0x19   :  { %38 = vadd.xlane.f32.xlu0 %v37_v5 }
  0xa2   :  { %v36_v6 = vpop.xlane.xlu0 %35 }
  0xa3   :  { %v41_v7 = vmul.f32 0.00390625, %v36_v6 }
  0xa5   :  { %v43_v8 = vsub.f32 %v30_v0, %v41_v7  ;;  %v44_v9 = vsub.f32 %v31_v1, %v41_v7 }
  0xa6   :  { %v39_v10 = vpop.xlane.xlu0 %38 }
  0xa7   :  { %v42_v11 = vmul.f32 0.00390625, %v39_v10  ;;  %v47_v12 = vmul.f32 %v43_v8, %v43_v8  ;;  %v48_v13 = vmul.f32 %v44_v9, %v44_v9 }
  0xa9   :  { %v45_v14 = vsub.f32 %v32_v2, %v42_v11  ;;  %v46_v15 = vsub.f32 %v33_v4, %v42_v11  ;;  %v51_v16 = vadd.f32 %v48_v13, %v47_v12 }
  0xab   :  { %52 = vadd.xlane.f32.xlu1 %v51_v16  ;;  %v49_v17 = vmul.f32 %v45_v14, %v45_v14  ;;  %v50_v18 = vmul.f32 %v46_v15, %v46_v15 }
  0xad   :  { %v54_v19 = vadd.f32 %v50_v18, %v49_v17 }
  0xaf   :  { %55 = vadd.xlane.f32.xlu1 %v54_v19 }
 0x138   :  { %v53_v20 = vpop.xlane.xlu1 %52 }
 0x139   :  { %v57_v21 = vmul.f32 0.00390625, %v53_v20 }
 0x13b   :  { %v59_v23 = vadd.f32 1e-05, %v57_v21 }
 0x13c   :  { %v56_v24 = vpop.xlane.xlu1 %55 }
 0x13d   :  { %109 = vrsqrt.f32 %v59_v23  ;;  %v58_v25 = vmul.f32 0.00390625, %v56_v24 }
 0x13f   :  { %v60_v27 = vadd.f32 1e-05, %v58_v25 }
 0x141   :  { %111 = vrsqrt.f32 %v60_v27 }
 0x147   :  { %v110_v34 = vpop.eup %109 }
 0x148   :  { %v63_v35 = vmul.f32 %v110_v34, %v43_v8  ;;  %v64_v36 = vmul.f32 %v110_v34, %v44_v9 }
 0x14a   :  { %v78_v39 = vmul.f32 %v71_v32, %v63_v35  ;;  %v79_v40 = vmul.f32 %v75_v33, %v64_v36 }
 0x14b   :  { %v112_v41 = vpop.eup %111 }
 0x14c   :  { %v93_v42 = vadd.f32 %v86_v37, %v78_v39  ;;  %v94_v43 = vadd.f32 %v90_v38, %v79_v40  ;;  %v65_v44 = vmul.f32 %v112_v41, %v45_v14  ;;  %v66_v45 = vmul.f32 %v112_v41, %v46_v15 }
 0x14e   :  { %97 = vst [vmem:[%s193_s3] sm:$0xff] %v93_v42  ;;  %98 = vst [vmem:[%s193_s3 + $0x8] sm:$0xff] %v94_v43  ;;  %v80_v46 = vmul.f32 %v71_v32, %v65_v44  ;;  %v81_v47 = vmul.f32 %v75_v33, %v66_v45 }
 0x150   :  { %v95_v48 = vadd.f32 %v86_v37, %v80_v46  ;;  %v96_v49 = vadd.f32 %v90_v38, %v81_v47 }
 0x152   :  { %99 = vst [vmem:[%s193_s3 + $0x10] sm:$0xff] %v95_v48  ;;  %100 = vst [vmem:[%s193_s3 + $0x18] sm:$0xff] %v96_v49 }
 0x153   :  { %105 = vsyncpa [#allocation3], 1 }

</bundles_post_ra>
